<compile_context>
chip_gen: v6e
topology: v6e:2x2x1
jax: 0.10.0
libtpu: 0.0.40
codegen_flags: <defaults>
</compile_context>

<pallas_src>
import functools

import jax
import jax.numpy as jnp
from jax.experimental import pallas as pl
from jax.experimental.pallas import tpu as pltpu


def _round_up(x, m):
    return ((x + m - 1) // m) * m


def _vmem_budget_bytes():
    """Physical VMEM per core, with headroom for Mosaic-internal scratch."""
    try:
        cap = int(pltpu.get_tpu_info().vmem_capacity_bytes)
    except Exception:
        cap = 64 * 1024 * 1024  # conservative (v7x-sized) fallback
    return max(32 * 1024 * 1024, int(cap * 0.85))


def _gcap_mlp_kernel(x_ref, w13_ref, b13_ref, w2_ref, const_ref, o_ref,
                     acc_ref, s_ref, ss_ref, *, eps, inv_inter, ti):
    # x tile: (tm, H); w13 block: (H, 2*ti); b13 block: (1, 2*ti) f32
    # w2 block (gamma folded): (ti, Hp); const: (2, Hp) f32 = [gamma@w2 ; beta@w2+b2]
    # output block: (tm, Hp)
    j = pl.program_id(1)

    @pl.when(j == 0)
    def _init():
        acc_ref[...] = jnp.zeros_like(acc_ref)
        s_ref[...] = jnp.zeros_like(s_ref)
        ss_ref[...] = jnp.zeros_like(ss_ref)

    x = x_ref[...]  # stored (bf16) dtype; MXU accumulates in f32.

    # Fused gate matmul: one dot for both w1 and w3 columns of this I tile.
    h = jnp.dot(x, w13_ref[...], preferred_element_type=jnp.float32)
    h = h + b13_ref[...]                       # f32 bias
    h1 = h[:, :ti]
    h3 = h[:, ti:]

    # SwiGLU: SiLU(h1) * h3, in f32.
    g = (h1 * jax.nn.sigmoid(h1)) * h3         # (tm, ti)

    # One-pass LayerNorm statistics: sum and sum-of-squares.
    s_ref[...] += jnp.sum(g, axis=-1, keepdims=True)
    ss_ref[...] += jnp.sum(g * g, axis=-1, keepdims=True)

    # gamma is already folded into w2, so just project and accumulate.
    acc_ref[...] += jnp.dot(g.astype(w2_ref.dtype), w2_ref[...],
                            preferred_element_type=jnp.float32)

    @pl.when(j == pl.num_programs(1) - 1)
    def _finalize():
        mean = s_ref[...] * inv_inter                                  # (tm, 1)
        var = jnp.maximum(ss_ref[...] * inv_inter - mean * mean, 0.0)  # (tm, 1)
        inv = jax.lax.rsqrt(var + eps)
        c = const_ref[...]
        gw2 = c[0:1, :]      # sum_i gamma_i * w2[i, :]
        bout = c[1:2, :]     # beta @ w2 + b2
        y = inv * acc_ref[...] - (mean * inv) * gw2 + bout
        o_ref[...] = y.astype(o_ref.dtype)


def gcap_attn_mlp(x, params, *, eps=1e-6, tm=None, ti=512,
                  operand_dtype=jnp.bfloat16):
    """x: (..., H). params: dict with pre-transposed linear weights (in, out)."""
    orig_shape = x.shape
    H = orig_shape[-1]
    x2d = x.reshape(-1, H)
    M = x2d.shape[0]
    I = params["w1"].shape[1]
    out_dtype = x.dtype

    # MXU-friendly operand dtype (f32 operands force multi-pass MXU emulation).
    op_dtype = jnp.dtype(operand_dtype)
    if jnp.dtype(x.dtype).itemsize < op_dtype.itemsize:
        op_dtype = jnp.dtype(x.dtype)
    ob = op_dtype.itemsize
    outb = jnp.dtype(out_dtype).itemsize
    sub = {1: 32, 2: 16}.get(ob, 8)          # dtype-aware sublane multiple

    Hp = _round_up(H, 128)                   # lane-dense output stores

    # --- tile selection (VMEM-budget aware) -------------------------------
    budget = _vmem_budget_bytes()
    if tm is None:
        tm = 1024 if budget >= 96 * 1024 * 1024 else 512  # 128-MiB parts vs v7x
    tm_eff = max(sub, min(_round_up(tm, sub), _round_up(M, sub)))
    # Keep >= 2 row tiles when M allows (pipelining / megacore sharding).
    if M > sub and pl.cdiv(M, tm_eff) < 2:
        tm_eff = max(sub, _round_up(pl.cdiv(M, 2), sub))
    ti_eff = max(128, min(_round_up(ti, 128), _round_up(I, 128)))

    def footprint(tm_, ti_):
        return (2 * tm_ * H * ob             # x (double buffered)
                + 2 * H * 2 * ti_ * ob       # fused w1||w3
                + 2 * 8 * 2 * ti_ * 4        # b1||b3 (sublane-padded)
                + 2 * ti_ * Hp * ob          # gamma-folded w2
                + 2 * 8 * Hp * 4             # (2, Hp) constants (sublane-padded)
                + 2 * tm_ * Hp * outb        # output
                + tm_ * Hp * 4               # f32 accumulator
                + 2 * tm_ * 128 * 4)         # LN stat scratch (lane-padded)

    while footprint(tm_eff, ti_eff) > budget:
        if tm_eff > sub and (tm_eff >= ti_eff or ti_eff <= 128):
            tm_eff = max(sub, _round_up(tm_eff // 2, sub))
        elif ti_eff > 128:
            ti_eff = max(128, _round_up(ti_eff // 2, 128))
        else:
            break

    Mp = _round_up(M, tm_eff)
    Ip = _round_up(I, ti_eff)
    nI = Ip // ti_eff

    # --- operand preparation ----------------------------------------------
    x_p = x2d if Mp == M else jnp.pad(x2d, ((0, Mp - M), (0, 0)))
    x_p = x_p.astype(op_dtype)

    f32 = jnp.float32
    w1 = params["w1"].astype(f32)
    w3 = params["w3"].astype(f32)
    b1 = params["b1"].reshape(1, I).astype(f32)
    b3 = params["b3"].reshape(1, I).astype(f32)
    gamma = params["gamma"].reshape(1, I).astype(f32)
    beta = params["beta"].reshape(1, I).astype(f32)
    w2 = params["w2"].astype(f32)
    b2 = params["b2"].reshape(1, H).astype(f32)

    pad_i = Ip - I
    if pad_i:
        # Zero padding => padded g == 0, so LN stats stay exact (inv_inter=1/I).
        w1 = jnp.pad(w1, ((0, 0), (0, pad_i)))
        w3 = jnp.pad(w3, ((0, 0), (0, pad_i)))
        b1 = jnp.pad(b1, ((0, 0), (0, pad_i)))
        b3 = jnp.pad(b3, ((0, 0), (0, pad_i)))
        gamma = jnp.pad(gamma, ((0, 0), (0, pad_i)))
        beta = jnp.pad(beta, ((0, 0), (0, pad_i)))
        w2 = jnp.pad(w2, ((0, pad_i), (0, 0)))
    pad_h = Hp - H
    if pad_h:
        w2 = jnp.pad(w2, ((0, 0), (0, pad_h)))
        b2 = jnp.pad(b2, ((0, 0), (0, pad_h)))

    # Fuse w1||w3 per intermediate tile: block j holds [w1 tile j | w3 tile j].
    w13 = jnp.concatenate(
        [w1.reshape(H, nI, ti_eff), w3.reshape(H, nI, ti_eff)],
        axis=-1).reshape(H, 2 * Ip).astype(op_dtype)
    b13 = jnp.concatenate(
        [b1.reshape(1, nI, ti_eff), b3.reshape(1, nI, ti_eff)],
        axis=-1).reshape(1, 2 * Ip)                       # stays f32

    # Fold LN gamma into w2; pack the two (1, Hp) correction rows together.
    w2s = (w2 * gamma.reshape(Ip, 1)).astype(op_dtype)
    gw2 = jnp.sum(w2s.astype(f32), axis=0, keepdims=True)   # ones @ (gamma*w2)
    bout = beta @ w2 + b2                                    # (1, Hp)
    consts = jnp.concatenate([gw2, bout], axis=0)            # (2, Hp) f32

    grid = (Mp // tm_eff, Ip // ti_eff)
    n_row = grid[0]

    kernel = functools.partial(_gcap_mlp_kernel, eps=float(eps),
                               inv_inter=1.0 / float(I), ti=ti_eff)

    # Advisory cost estimate (counts weight re-streaming once per row tile).
    flops = 2 * Mp * H * (2 * Ip) + 2 * Mp * Ip * Hp
    transcendentals = Mp * Ip + Mp
    bytes_accessed = int(
        Mp * H * ob
        + n_row * (w13.size * ob + w2s.size * ob + b13.size * 4 + consts.size * 4)
        + Mp * Hp * outb)
    cost = pl.CostEstimate(flops=int(flops), transcendentals=int(transcendentals),
                           bytes_accessed=bytes_accessed)

    vmem_limit = int(min(budget,
                         max(footprint(tm_eff, ti_eff) + (4 << 20), 32 << 20)))

    out = pl.pallas_call(
        kernel,
        out_shape=jax.ShapeDtypeStruct((Mp, Hp), out_dtype),
        grid_spec=pltpu.PrefetchScalarGridSpec(
            num_scalar_prefetch=0,
            grid=grid,
            in_specs=[
                pl.BlockSpec((tm_eff, H), lambda i, j: (i, 0)),          # x rows
                pl.BlockSpec((H, 2 * ti_eff), lambda i, j: (0, j)),      # w1||w3
                pl.BlockSpec((1, 2 * ti_eff), lambda i, j: (0, j)),      # b1||b3
                pl.BlockSpec((ti_eff, Hp), lambda i, j: (j, 0)),         # gamma*w2
                pl.BlockSpec((2, Hp), lambda i, j: (0, 0)),              # constants
            ],
            out_specs=pl.BlockSpec((tm_eff, Hp), lambda i, j: (i, 0)),
            scratch_shapes=[
                pltpu.VMEM((tm_eff, Hp), jnp.float32),  # w2 accumulator
                pltpu.VMEM((tm_eff, 1), jnp.float32),   # sum(g)
                pltpu.VMEM((tm_eff, 1), jnp.float32),   # sum(g^2)
            ],
        ),
        compiler_params=pltpu.CompilerParams(
            dimension_semantics=("parallel", "arbitrary"),
            vmem_limit_bytes=vmem_limit),
        cost_estimate=cost,
    )(x_p, w13, b13, w2s, consts)

    out = out[:M, :H]
    return out.reshape(orig_shape)


def init_params(key, hidden_size, intermediate_size, dtype=jnp.float32):
    ks = jax.random.split(key, 6)
    scale_h = 1.0 / jnp.sqrt(hidden_size)
    scale_i = 1.0 / jnp.sqrt(intermediate_size)
    # nn.Linear weight is (out, in); we store the transpose (in, out).
    return {
        "w1": jax.random.uniform(ks[0], (hidden_size, intermediate_size),
                                 minval=-scale_h, maxval=scale_h).astype(dtype),
        "b1": jax.random.uniform(ks[1], (1, intermediate_size),
                                 minval=-scale_h, maxval=scale_h).astype(dtype),
        "w3": jax.random.uniform(ks[2], (hidden_size, intermediate_size),
                                 minval=-scale_h, maxval=scale_h).astype(dtype),
        "b3": jax.random.uniform(ks[3], (1, intermediate_size),
                                 minval=-scale_h, maxval=scale_h).astype(dtype),
        "gamma": jnp.ones((1, intermediate_size), dtype),
        "beta": jnp.zeros((1, intermediate_size), dtype),
        "w2": jax.random.uniform(ks[4], (intermediate_size, hidden_size),
                                 minval=-scale_i, maxval=scale_i).astype(dtype),
        "b2": jax.random.uniform(ks[5], (1, hidden_size),
                                 minval=-scale_i, maxval=scale_i).astype(dtype),
    }


def _reference(x, params, eps):
    x32 = x.astype(jnp.float32)
    h1 = x32 @ params["w1"].astype(jnp.float32) + params["b1"].astype(jnp.float32)
    h3 = x32 @ params["w3"].astype(jnp.float32) + params["b3"].astype(jnp.float32)
    g = (h1 * jax.nn.sigmoid(h1)) * h3
    mean = jnp.mean(g, axis=-1, keepdims=True)
    var = jnp.mean((g - mean) ** 2, axis=-1, keepdims=True)
    ln = ((g - mean) * jax.lax.rsqrt(var + eps) * params["gamma"].astype(jnp.float32)
          + params["beta"].astype(jnp.float32))
    return (ln @ params["w2"].astype(jnp.float32)
            + params["b2"].astype(jnp.float32)).astype(x.dtype)


if __name__ == "__main__":
    B, S, H, I = 2, 8, 32, 64      # batch, seq, hidden_size, intermediate_size
    eps = 1e-6
    dtype = jnp.bfloat16           # realistic TPU operand dtype

    key = jax.random.PRNGKey(0)
    kx, kp = jax.random.split(key)
    x = jax.random.normal(kx, (B, S, H), dtype=jnp.float32).astype(dtype)
    params = init_params(kp, H, I, dtype=dtype)

    y = gcap_attn_mlp(x, params, eps=eps)
    y = jax.block_until_ready(y)

    y_ref = _reference(x.reshape(-1, H), params, eps).reshape(B, S, H)
    assert y.shape == x.shape and y.dtype == x.dtype
    # The kernel's algebraically regrouped output (y = inv*A - mean*inv*(gamma@w2)
    # + beta@w2 + b2) and bf16 MXU operands round differently from the f32
    # two-pass reference; compare at bf16-level tolerance.
    assert jnp.allclose(y.astype(jnp.float32), y_ref.astype(jnp.float32),
                        atol=2e-2, rtol=2e-2), "mismatch vs reference"

    print("KERNEL_OK")
</pallas_src>

<mosaic_0001>
module attributes {stable_mosaic.version = 11 : i64} {
  func.func @_gcap_mlp_kernel(%arg0: i32, %arg1: i32, %arg2: memref<16x32xbf16, #tpu.memory_space<vmem>>, %arg3: memref<32x256xbf16, #tpu.memory_space<vmem>>, %arg4: memref<1x256xf32, #tpu.memory_space<vmem>>, %arg5: memref<128x128xbf16, #tpu.memory_space<vmem>>, %arg6: memref<2x128xf32, #tpu.memory_space<vmem>>, %arg7: memref<16x128xbf16, #tpu.memory_space<vmem>>, %arg8: memref<16x128xf32, #tpu.memory_space<vmem>>, %arg9: memref<16x1xf32, #tpu.memory_space<vmem>>, %arg10: memref<16x1xf32, #tpu.memory_space<vmem>>) attributes {dimension_semantics = [#tpu.dimension_semantics<parallel>, #tpu.dimension_semantics<arbitrary>], iteration_bounds = array<i64: 1, 1>, scalar_prefetch = 0 : i64, scratch_operands = 3 : i64, tpu.core_type = #tpu.core_type<tc>, window_params = [{transform_indices = @transform_0, window_bounds = array<i64: 16, 32>}, {transform_indices = @transform_1, window_bounds = array<i64: 32, 256>}, {transform_indices = @transform_2, window_bounds = array<i64: 1, 256>}, {transform_indices = @transform_3, window_bounds = array<i64: 128, 128>}, {pipeline_mode = #tpu.pipeline_mode<synchronous>, transform_indices = @transform_4, window_bounds = array<i64: 2, 128>}, {transform_indices = @transform_5, window_bounds = array<i64: 16, 128>}]} {
    %c0_i32 = arith.constant 0 : i32
    %0 = arith.cmpi eq, %arg1, %c0_i32 : i32
    %1 = arith.extui %0 : i1 to i32
    %c0_i32_0 = arith.constant 0 : i32
    %2 = arith.cmpi ne, %1, %c0_i32_0 : i32
    scf.if %2 {
      %cst_26 = arith.constant 0.000000e+00 : f32
      %38 = vector.broadcast %cst_26 : f32 to vector<16x128xf32>
      %c0_27 = arith.constant 0 : index
      %c0_28 = arith.constant 0 : index
      %39 = vector.load %arg8[%c0_27, %c0_28] : memref<16x128xf32, #tpu.memory_space<vmem>>, vector<16x128xf32>
      tpu.vector_store %arg8[%c0_27, %c0_28], %38 {strides = array<i32>} : memref<16x128xf32, #tpu.memory_space<vmem>>, vector<16x128xf32>,
      %cst_29 = arith.constant 0.000000e+00 : f32
      %40 = vector.broadcast %cst_29 : f32 to vector<16x1xf32>
      %c0_30 = arith.constant 0 : index
      %c0_31 = arith.constant 0 : index
      %41 = vector.load %arg9[%c0_30, %c0_31] : memref<16x1xf32, #tpu.memory_space<vmem>>, vector<16x1xf32>
      tpu.vector_store %arg9[%c0_30, %c0_31], %40 {strides = array<i32>} : memref<16x1xf32, #tpu.memory_space<vmem>>, vector<16x1xf32>,
      %cst_32 = arith.constant 0.000000e+00 : f32
      %42 = vector.broadcast %cst_32 : f32 to vector<16x1xf32>
      %c0_33 = arith.constant 0 : index
      %c0_34 = arith.constant 0 : index
      %43 = vector.load %arg10[%c0_33, %c0_34] : memref<16x1xf32, #tpu.memory_space<vmem>>, vector<16x1xf32>
      tpu.vector_store %arg10[%c0_33, %c0_34], %42 {strides = array<i32>} : memref<16x1xf32, #tpu.memory_space<vmem>>, vector<16x1xf32>,
    } else {
    }
    %c0 = arith.constant 0 : index
    %c0_1 = arith.constant 0 : index
    %3 = vector.load %arg2[%c0, %c0_1] : memref<16x32xbf16, #tpu.memory_space<vmem>>, vector<16x32xbf16>
    %c0_2 = arith.constant 0 : index
    %c0_3 = arith.constant 0 : index
    %4 = vector.load %arg3[%c0_2, %c0_3] : memref<32x256xbf16, #tpu.memory_space<vmem>>, vector<32x256xbf16>
    %cst = arith.constant dense<0.000000e+00> : vector<16x256xf32>
    %5 = tpu.matmul %3, %4, %cst {dimension_numbers = #tpu.dot_dimension_numbers<[1], [0], [0], [1], [0, 0, 1, 1], [], []>} : vector<16x32xbf16>, vector<32x256xbf16>, vector<16x256xf32> -> vector<16x256xf32>
    %c0_4 = arith.constant 0 : index
    %c0_5 = arith.constant 0 : index
    %6 = vector.load %arg4[%c0_4, %c0_5] : memref<1x256xf32, #tpu.memory_space<vmem>>, vector<1x256xf32>
    %7 = vector.broadcast %6 : vector<1x256xf32> to vector<16x256xf32>
    %8 = arith.addf %5, %7 : vector<16x256xf32>
    %9 = vector.extract_strided_slice %8 {offsets = [0, 0], sizes = [16, 128], strides = [1, 1]} : vector<16x256xf32> to vector<16x128xf32>
    %10 = vector.extract_strided_slice %8 {offsets = [0, 128], sizes = [16, 128], strides = [1, 1]} : vector<16x256xf32> to vector<16x128xf32>
    %11 = arith.negf %9 : vector<16x128xf32>
    %12 = math.exp %11 : vector<16x128xf32>
    %cst_6 = arith.constant 1.000000e+00 : f32
    %13 = vector.broadcast %cst_6 : f32 to vector<16x128xf32>
    %14 = arith.addf %13, %12 : vector<16x128xf32>
    %15 = arith.divf %13, %14 : vector<16x128xf32>
    %16 = arith.mulf %9, %15 : vector<16x128xf32>
    %17 = arith.mulf %16, %10 : vector<16x128xf32>
    %c0_7 = arith.constant 0 : index
    %c0_8 = arith.constant 0 : index
    %18 = vector.load %arg9[%c0_7, %c0_8] : memref<16x1xf32, #tpu.memory_space<vmem>>, vector<16x1xf32>
    %cst_9 = arith.constant dense<0.000000e+00> : vector<16xf32>
    %19 = vector.multi_reduction <add>, %17, %cst_9 [1] : vector<16x128xf32> to vector<16xf32>
    %20 = vector.shape_cast %19 : vector<16xf32> to vector<16x1xf32>
    %21 = arith.addf %18, %20 : vector<16x1xf32>
    %c0_10 = arith.constant 0 : index
    %c0_11 = arith.constant 0 : index
    %22 = vector.load %arg9[%c0_10, %c0_11] : memref<16x1xf32, #tpu.memory_space<vmem>>, vector<16x1xf32>
    tpu.vector_store %arg9[%c0_10, %c0_11], %21 {strides = array<i32>} : memref<16x1xf32, #tpu.memory_space<vmem>>, vector<16x1xf32>,
    %c0_12 = arith.constant 0 : index
    %c0_13 = arith.constant 0 : index
    %23 = vector.load %arg10[%c0_12, %c0_13] : memref<16x1xf32, #tpu.memory_space<vmem>>, vector<16x1xf32>
    %24 = arith.mulf %17, %17 : vector<16x128xf32>
    %cst_14 = arith.constant dense<0.000000e+00> : vector<16xf32>
    %25 = vector.multi_reduction <add>, %24, %cst_14 [1] : vector<16x128xf32> to vector<16xf32>
    %26 = vector.shape_cast %25 : vector<16xf32> to vector<16x1xf32>
    %27 = arith.addf %23, %26 : vector<16x1xf32>
    %c0_15 = arith.constant 0 : index
    %c0_16 = arith.constant 0 : index
    %28 = vector.load %arg10[%c0_15, %c0_16] : memref<16x1xf32, #tpu.memory_space<vmem>>, vector<16x1xf32>
    tpu.vector_store %arg10[%c0_15, %c0_16], %27 {strides = array<i32>} : memref<16x1xf32, #tpu.memory_space<vmem>>, vector<16x1xf32>,
    %c0_17 = arith.constant 0 : index
    %c0_18 = arith.constant 0 : index
    %29 = vector.load %arg8[%c0_17, %c0_18] : memref<16x128xf32, #tpu.memory_space<vmem>>, vector<16x128xf32>
    %30 = arith.truncf %17 : vector<16x128xf32> to vector<16x128xbf16>
    %c0_19 = arith.constant 0 : index
    %c0_20 = arith.constant 0 : index
    %31 = vector.load %arg5[%c0_19, %c0_20] : memref<128x128xbf16, #tpu.memory_space<vmem>>, vector<128x128xbf16>
    %cst_21 = arith.constant dense<0.000000e+00> : vector<16x128xf32>
    %32 = tpu.matmul %30, %31, %cst_21 {dimension_numbers = #tpu.dot_dimension_numbers<[1], [0], [0], [1], [0, 0, 1, 1], [], []>} : vector<16x128xbf16>, vector<128x128xbf16>, vector<16x128xf32> -> vector<16x128xf32>
    %33 = arith.addf %29, %32 : vector<16x128xf32>
    %c0_22 = arith.constant 0 : index
    %c0_23 = arith.constant 0 : index
    %34 = vector.load %arg8[%c0_22, %c0_23] : memref<16x128xf32, #tpu.memory_space<vmem>>, vector<16x128xf32>
    tpu.vector_store %arg8[%c0_22, %c0_23], %33 {strides = array<i32>} : memref<16x128xf32, #tpu.memory_space<vmem>>, vector<16x128xf32>,
    %c0_i32_24 = arith.constant 0 : i32
    %35 = arith.cmpi eq, %arg1, %c0_i32_24 : i32
    %36 = arith.extui %35 : i1 to i32
    %c0_i32_25 = arith.constant 0 : i32
    %37 = arith.cmpi ne, %36, %c0_i32_25 : i32
    scf.if %37 {
      %c0_26 = arith.constant 0 : index
      %c0_27 = arith.constant 0 : index
      %38 = vector.load %arg9[%c0_26, %c0_27] : memref<16x1xf32, #tpu.memory_space<vmem>>, vector<16x1xf32>
      %cst_28 = arith.constant 1.562500e-02 : f32
      %39 = vector.broadcast %cst_28 : f32 to vector<16x1xf32>
      %40 = arith.mulf %38, %39 : vector<16x1xf32>
      %c0_29 = arith.constant 0 : index
      %c0_30 = arith.constant 0 : index
      %41 = vector.load %arg10[%c0_29, %c0_30] : memref<16x1xf32, #tpu.memory_space<vmem>>, vector<16x1xf32>
      %cst_31 = arith.constant 1.562500e-02 : f32
      %42 = vector.broadcast %cst_31 : f32 to vector<16x1xf32>
      %43 = arith.mulf %41, %42 : vector<16x1xf32>
      %44 = arith.mulf %40, %40 : vector<16x1xf32>
      %45 = arith.subf %43, %44 : vector<16x1xf32>
      %cst_32 = arith.constant 0.000000e+00 : f32
      %46 = vector.broadcast %cst_32 : f32 to vector<16x1xf32>
      %47 = arith.maximumf %45, %46 : vector<16x1xf32>
      %cst_33 = arith.constant 9.99999997E-7 : f32
      %48 = vector.broadcast %cst_33 : f32 to vector<16x1xf32>
      %49 = arith.addf %47, %48 : vector<16x1xf32>
      %50 = math.rsqrt %49 : vector<16x1xf32>
      %c0_34 = arith.constant 0 : index
      %c0_35 = arith.constant 0 : index
      %51 = vector.load %arg6[%c0_34, %c0_35] : memref<2x128xf32, #tpu.memory_space<vmem>>, vector<2x128xf32>
      %52 = vector.extract_strided_slice %51 {offsets = [0, 0], sizes = [1, 128], strides = [1, 1]} : vector<2x128xf32> to vector<1x128xf32>
      %53 = vector.extract_strided_slice %51 {offsets = [1, 0], sizes = [1, 128], strides = [1, 1]} : vector<2x128xf32> to vector<1x128xf32>
      %c0_36 = arith.constant 0 : index
      %c0_37 = arith.constant 0 : index
      %54 = vector.load %arg8[%c0_36, %c0_37] : memref<16x128xf32, #tpu.memory_space<vmem>>, vector<16x128xf32>
      %55 = vector.broadcast %50 : vector<16x1xf32> to vector<16x128xf32>
      %56 = arith.mulf %55, %54 : vector<16x128xf32>
      %57 = arith.mulf %40, %50 : vector<16x1xf32>
      %58 = vector.broadcast %57 : vector<16x1xf32> to vector<16x128xf32>
      %59 = vector.broadcast %52 : vector<1x128xf32> to vector<16x128xf32>
      %60 = arith.mulf %58, %59 : vector<16x128xf32>
      %61 = arith.subf %56, %60 : vector<16x128xf32>
      %62 = vector.broadcast %53 : vector<1x128xf32> to vector<16x128xf32>
      %63 = arith.addf %61, %62 : vector<16x128xf32>
      %64 = arith.truncf %63 : vector<16x128xf32> to vector<16x128xbf16>
      %c0_38 = arith.constant 0 : index
      %c0_39 = arith.constant 0 : index
      %65 = vector.load %arg7[%c0_38, %c0_39] : memref<16x128xbf16, #tpu.memory_space<vmem>>, vector<16x128xbf16>
      tpu.vector_store %arg7[%c0_38, %c0_39], %64 {strides = array<i32>} : memref<16x128xbf16, #tpu.memory_space<vmem>>, vector<16x128xbf16>,
    } else {
    }
    return
  }
  func.func @transform_0(%arg0: i32, %arg1: i32) -> (i32, i32) {
    %c0_i32 = arith.constant 0 : i32
    %c0_i32_0 = arith.constant 0 : i32
    return %arg0, %c0_i32 : i32, i32
  }
  func.func @transform_1(%arg0: i32, %arg1: i32) -> (i32, i32) {
    %c0_i32 = arith.constant 0 : i32
    %c0_i32_0 = arith.constant 0 : i32
    return %c0_i32, %arg1 : i32, i32
  }
  func.func @transform_2(%arg0: i32, %arg1: i32) -> (i32, i32) {
    %c0_i32 = arith.constant 0 : i32
    %c0_i32_0 = arith.constant 0 : i32
    return %c0_i32, %arg1 : i32, i32
  }
  func.func @transform_3(%arg0: i32, %arg1: i32) -> (i32, i32) {
    %c0_i32 = arith.constant 0 : i32
    %c0_i32_0 = arith.constant 0 : i32
    return %arg1, %c0_i32 : i32, i32
  }
  func.func @transform_4(%arg0: i32, %arg1: i32) -> (i32, i32) {
    %c0_i32 = arith.constant 0 : i32
    %c0_i32_0 = arith.constant 0 : i32
    %c0_i32_1 = arith.constant 0 : i32
    return %c0_i32, %c0_i32_0 : i32, i32
  }
  func.func @transform_5(%arg0: i32, %arg1: i32) -> (i32, i32) {
    %c0_i32 = arith.constant 0 : i32
    %c0_i32_0 = arith.constant 0 : i32
    return %arg0, %c0_i32 : i32, i32
  }
}

</mosaic_0001>

<bundles_post_ra>
// kernel: tpu_custom_call.1
= control target key start
LH: loop header
LB: loop body
LE: loop exit
PB: predicated region body
PF: predicated region fallthrough
CT: control target
= control target key end

     0   :  { %10 = vsyncpa [#allocation6], 0  ;;  %s673_s0 = inlined_call_operand.hbm [shape: bf16[16,32], index: 0, kind: input, shape index: {}]   ;;  %s674_s1 = inlined_call_operand.hbm [shape: bf16[32,256], index: 1, kind: input, shape index: {}]   ;;  %s675_s2 = inlined_call_operand.vmem [shape: f32[1,256], index: 2, kind: input, shape index: {}]   ;;  %s676_s3 = inlined_call_operand.hbm [shape: bf16[128,128], index: 3, kind: input, shape index: {}]   ;;  %s677_s4 = inlined_call_operand.vmem [shape: f32[2,128], index: 4, kind: input, shape index: {}]   ;;  %s678_s5 = inlined_call_operand.hbm [shape: bf16[16,128], index: 5, kind: output, shape index: {}]  }
   0x1   :  { %11 = vsyncpa [#allocation9], 0 }
   0x2   :  { %12 = vsyncpa [#allocation7], 0  ;;  %s585_s18 = smov [#allocation8]  }
   0x3   :  { %s30_s19 = sshll.u32 %s585_s18, 4  ;;  %s31_s19 = int_to_ptr.vmem [resolvable:$true] %s30_s19 }
   0x4   :  { %s507_s20 = scalar_lea.vmem %s31_s19, 512  ;;  %p512_p1 = scmp.lt.s32.totalorder %s31_s19, %s31_s19 }
   0x5   :  { %p508_p0 = scmp.ne.s32.totalorder %s31_s19, %s507_s20  ;;  %p513_p2 = scmp.lt.s32.totalorder %s507_s20, %s507_s20 }
   0x7   :  { %p514_p3 = por %p513_p2, %p512_p1 }
   0x9   :  { %p515_p4 = pnand %p514_p3, %p508_p0 }
   0xb   :  { %518 = shalt.err (!%p515_p4)
}
   0xc   :  { %s586_s21 = smov 128   ;;  %s587_s22 = smov 8  }
   0xd   :  { %36 = dma.hbm_to_vmem [thread:$0]  %s674_s1, 512, %s31_s19, [#allocation9], %s586_s21, %s586_s21, %s587_s22  }
   0xe   :  { %s588_s25 = smov [#allocation5]  }
   0xf   :  { %s18_s26 = sshll.u32 %s588_s25, 4  ;;  %s19_s26 = int_to_ptr.vmem [resolvable:$true] %s18_s26 }
  0x10   :  { %s527_s27 = scalar_lea.vmem %s19_s26, 128  ;;  %p532_p6 = scmp.lt.s32.totalorder %s19_s26, %s19_s26 }
  0x11   :  { %p528_p5 = scmp.ne.s32.totalorder %s19_s26, %s527_s27  ;;  %p533_p7 = scmp.lt.s32.totalorder %s527_s27, %s527_s27 }
  0x13   :  { %p534_p8 = por %p533_p7, %p532_p6 }
  0x15   :  { %p535_p9 = pnand %p534_p8, %p528_p5 }
  0x17   :  { %538 = shalt.err (!%p535_p9)
}
  0x18   :  { %s589_s28 = smov 64   ;;  %s590_s29 = smov 4  }
  0x19   :  { %24 = dma.hbm_to_vmem [thread:$0]  %s673_s0, 128, %s19_s26, [#allocation6], %s589_s28, %s589_s28, %s590_s29  }
  0x1a   :  { %s591_s1 = smov [#allocation10]  }
  0x1b   :  { %s44_s7 = sshll.u32 %s591_s1, 4  ;;  %s45_s7 = int_to_ptr.vmem [resolvable:$true] %s44_s7 }
  0x1c   :  { %s547_s8 = scalar_lea.vmem %s45_s7, 1024  ;;  %p552_p11 = scmp.lt.s32.totalorder %s45_s7, %s45_s7 }
  0x1d   :  { %p548_p10 = scmp.ne.s32.totalorder %s45_s7, %s547_s8  ;;  %p553_p12 = scmp.lt.s32.totalorder %s547_s8, %s547_s8 }
  0x1f   :  { %p554_p13 = por %p553_p12, %p552_p11 }
  0x21   :  { %p555_p0 = pnand %p554_p13, %p548_p10 }
  0x23   :  { %558 = shalt.err (!%p555_p0)
}
  0x24   :  { %50 = dma.hbm_to_vmem [thread:$0]  %s676_s3, 1024, %s45_s7, [#allocation9], %s589_s28, %s589_s28, %s590_s29  }
  0x25   :  { %579 = dma.done.wait [#allocation6], 128  }
  0x26   :  { %580 = vsyncadd [#allocation6], 4294967168 }
  0x27   :  { %581 = dma.done.wait [#allocation9], 1536  }
  0x28   :  { %582 = vsyncadd [#allocation9], 4294965760  ;;  %v592_v0 = vmov 0   ;;  %v472_v1 = vld [vmem:[#allocation8 + $0x14] ss:$8 sps:$4 sm:$0xff]   ;;  %vm117_vm0 = vcmask 261120   ;;  %v82_v15 = vlaneseq }
  0x29   :  { %153 = vmatprep.mubr.bf16.mxu0 %v592_v0  ;;  %470 = vset.pattern.permute.xlu0 %v592_v0  ;;  %v474_v2 = vld [vmem:[#allocation8 + $0x10] ss:$8 sps:$4 sm:$0xff]   ;;  %v475_v3 = vld [vmem:[#allocation8 + $0x4] ss:$8 sps:$4 sm:$0xff]   ;;  %v477_v4 = vld [vmem:[#allocation8] ss:$8 sps:$4 sm:$0xff]  }
  0x2a   :  { %471 = vset.pattern.permute.xlu1 %v592_v0  ;;  %133 = vmatprep.subr.bf16.mxu0 %v472_v1  ;;  %v478_v5 = vld [vmem:[#allocation5] sm:$0xff]   ;;  %v593_v7 = vmov 0.0   ;;  %v480_v8 = vld [vmem:[#allocation10 + $0x30] sm:$0xff]   ;;  %v481_v9 = vld [vmem:[#allocation10 + $0x28] sm:$0xff]   ;;  %vm594_vm1 = vmmov 0   ;;  %vm69_vm2 = vcmask 7168  }
  0x2b   :  { %134 = vmatpush1.bf16.msra.mxu0 %v474_v2  ;;  %v479_v6 = vld [vmem:[#allocation10 + $0x38] sm:$0xff]   ;;  %439 = vmatprep.subr.bf16.mxu1 %v593_v7  ;;  %v482_v10 = vld [vmem:[#allocation10 + $0x20] sm:$0xff]   ;;  %v484_v12 = vld [vmem:[#allocation10 + $0x10] sm:$0xff]   ;;  %70 = vst.msk [vmem:[#allocation3] sm:$0xff] %vm69_vm2, %v593_v7  ;;  %v645_v16 = vshrl.u32 %v82_v15, 7  ;;  %s595_s12 = smov [#allocation11]  }
  0x2c   :  { %135 = vmatprep.subr.bf16.mxu0 %v475_v3  ;;  %440 = vmatpush3.bf16.msra.mxu1 %v479_v6  ;;  %v483_v11 = vld [vmem:[#allocation10 + $0x18] sm:$0xff]   ;;  %v485_v13 = vld [vmem:[#allocation10 + $0x8] sm:$0xff]   ;;  %v486_v14 = vld [vmem:[#allocation10] sm:$0xff]   ;;  %71 = vst.msk [vmem:[#allocation3 + $0x8] sm:$0xff] %vm69_vm2, %v593_v7  ;;  %s392_s13 = sshll.u32 %s595_s12, 4  ;;  %s393_s13 = int_to_ptr.vmem [resolvable:$true] %s392_s13 }
  0x2d   :  { %441 = vmatprep.subr.bf16.mxu1 %v593_v7  ;;  %455 = vmatprep.mubr.msk.bf16.mxu1 %vm594_vm1, %v593_v7  ;;  %72 = vst.msk [vmem:[#allocation4] sm:$0xff] %vm69_vm2, %v593_v7  ;;  %73 = vst.msk [vmem:[#allocation4 + $0x8] sm:$0xff] %vm69_vm2, %v593_v7  ;;  %v84_v17 = vsub.s32 0, %v645_v16  ;;  %v80_v18 = vld [vmem:[%s675_s2] sm:$0x3]  ;;  %v88_v31 = vsub.s32 1, %v645_v16  ;;  %p564_p2 = scmp.lt.s32.totalorder %s393_s13, %s393_s13 }
  0x2f   :  { %136 = vmatpush1.bf16.msra.mxu0 %v477_v4  ;;  %v85_v19 = vrot.slane %v80_v18, %v84_v17  ;;  %v89_v32 = vrot.slane %v80_v18, %v88_v31 }
  0x30   :  { %442 = vmatpush3.bf16.msra.mxu1 %v480_v8 }
  0x31   :  { %443 = vmatprep.subr.bf16.mxu1 %v593_v7 }
  0x32   :  { %410 = vmatmul.mubr.msk.bf16.vlgmr.msra.gmra.mxu0 %vm117_vm0, %v478_v5  ;;  %v180_v45 = vld [vmem:[#allocation3] sm:$0xff] }
  0x33   :  { %v181_v50 = vld [vmem:[#allocation3 + $0x8] sm:$0xff] }
  0x34   :  { %444 = vmatpush3.bf16.msra.mxu1 %v481_v9  ;;  %v191_v47 = vld [vmem:[#allocation4] sm:$0xff]  ;;  %v192_v53 = vld [vmem:[#allocation4 + $0x8] sm:$0xff] }
  0x35   :  { %445 = vmatprep.subr.bf16.mxu1 %v593_v7 }
  0x38   :  { %446 = vmatpush3.bf16.msra.mxu1 %v482_v10 }
  0x39   :  { %447 = vmatprep.subr.bf16.mxu1 %v593_v7 }
  0x3c   :  { %448 = vmatpush3.bf16.msra.mxu1 %v483_v11 }
  0x3d   :  { %449 = vmatprep.subr.bf16.mxu1 %v593_v7 }
  0x40   :  { %450 = vmatpush3.bf16.msra.mxu1 %v484_v12 }
  0x41   :  { %451 = vmatprep.subr.bf16.mxu1 %v593_v7 }
  0x44   :  { %452 = vmatpush3.bf16.msra.mxu1 %v485_v13 }
  0x45   :  { %453 = vmatprep.subr.bf16.mxu1 %v593_v7 }
  0x48   :  { %454 = vmatpush3.bf16.msra.mxu1 %v486_v14 }
  0xf2   :  { %v155_v20 = vpop.f32.mrf.mxu0 }
  0xf3   :  { %v156_v21 = vadd.f32 %v155_v20, %v85_v19 }
  0xf4   :  { %v157_v22 = vpop.f32.mrf.mxu0 }
  0xf5   :  { %v411_v23 = vmul.f32 -1.442695, %v156_v21  ;;  %v158_v35 = vadd.f32 %v157_v22, %v89_v32 }
  0xf6   :  { %v159_v24 = vpop.f32.mrf.mxu0 }
  0xf7   :  { %487 = vpow2.f32 %v411_v23  ;;  %v160_v25 = vadd.f32 %v159_v24, %v85_v19  ;;  %v336_v19 = vld [vmem:[%s677_s4] sm:$0x3]  ;;  %s559_s4 = scalar_lea.vmem %s393_s13, 128 }
  0xf8   :  { %v161_v36 = vpop.f32.mrf.mxu0  ;;  %p560_p1 = scmp.ne.s32.totalorder %s393_s13, %s559_s4  ;;  %p565_p3 = scmp.lt.s32.totalorder %s559_s4, %s559_s4 }
  0xf9   :  { %v412_v26 = vmul.f32 -1.442695, %v160_v25  ;;  %v162_v40 = vadd.f32 %v161_v36, %v89_v32 }
  0xfa   :  { %p566_p4 = por %p565_p3, %p564_p2 }
  0xfb   :  { %489 = vpow2.f32 %v412_v26 }
  0xfc   :  { %p567_p5 = pnand %p566_p4, %p560_p1 }
 0x104   :  { %v488_v27 = vpop.eup %487 }
 0x105   :  { %v170_v28 = vadd.f32 1.0, %v488_v27  ;;  %v374_v27 = vrot.slane %v336_v19, %v88_v31 }
 0x107   :  { %491 = vrcp.f32 %v170_v28 }
 0x108   :  { %v490_v29 = vpop.eup %489 }
 0x109   :  { %v171_v30 = vadd.f32 1.0, %v490_v29 }
 0x10b   :  { %493 = vrcp.f32 %v171_v30 }
 0x114   :  { %v492_v33 = vpop.eup %491 }
 0x115   :  { %v176_v34 = vmul.f32 %v492_v33, %v156_v21  ;;  %v366_v21 = vrot.slane %v336_v19, %v84_v17 }
 0x117   :  { %v178_v37 = vmul.f32 %v176_v34, %v158_v35 }
 0x118   :  { %v494_v38 = vpop.eup %493 }
 0x119   :  { %v177_v39 = vmul.f32 %v494_v38, %v160_v25  ;;  %182 = vadd.xlane.f32.xlu0 %v178_v37  ;;  %v193_v41 = vmul.f32 %v178_v37, %v178_v37 }
 0x11b   :  { %v179_v42 = vmul.f32 %v177_v39, %v162_v40  ;;  %195 = vadd.xlane.f32.xlu1 %v193_v41 }
 0x11d   :  { %184 = vadd.xlane.f32.xlu0 %v179_v42  ;;  %v205_v43 = vpack.c.bf16 %v179_v42, %v178_v37  ;;  %v194_v44 = vmul.f32 %v179_v42, %v179_v42 }
 0x11f   :  { %456 = vmatmul.mubr.bf16.vlgmr.msra.gmra.mxu1 %v205_v43  ;;  %197 = vadd.xlane.f32.xlu1 %v194_v44 }
 0x1a2   :  { %v183_v46 = vpop.xlane.xlu0 %182 }
 0x1a3   :  { %v186_v48 = vadd.f32 %v183_v46, %v180_v45 }
 0x1a4   :  { %v196_v49 = vpop.xlane.xlu1 %195 }
 0x1a5   :  { %189 = vst.msk [vmem:[#allocation3] sm:$0xff] %vm69_vm2, %v186_v48  ;;  %v199_v51 = vadd.f32 %v196_v49, %v191_v47 }
 0x1a6   :  { %v185_v52 = vpop.xlane.xlu0 %184 }
 0x1a7   :  { %201 = vst.msk [vmem:[#allocation4] sm:$0xff] %vm69_vm2, %v199_v51  ;;  %v187_v54 = vadd.f32 %v185_v52, %v181_v50 }
 0x1a8   :  { %v198_v55 = vpop.xlane.xlu1 %197 }
 0x1a9   :  { %190 = vst.msk [vmem:[#allocation3 + $0x8] sm:$0xff] %vm69_vm2, %v187_v54  ;;  %v200_v56 = vadd.f32 %v198_v55, %v192_v53 }
 0x1ab   :  { %202 = vst.msk [vmem:[#allocation4 + $0x8] sm:$0xff] %vm69_vm2, %v200_v56 }
 0x1ac   :  { %v318_v57 = vld [vmem:[#allocation3] sm:$0xff] }
 0x1ad   :  { %v320_v58 = vmul.f32 0.015625, %v318_v57 }
 0x1ae   :  { %v322_v59 = vld [vmem:[#allocation4] sm:$0xff] }
 0x1af   :  { %v324_v60 = vmul.f32 0.015625, %v322_v59  ;;  %v326_v61 = vmul.f32 %v320_v58, %v320_v58 }
 0x1b0   :  { %v319_v62 = vld [vmem:[#allocation3 + $0x8] sm:$0xff] }
 0x1b1   :  { %v328_v63 = vsub.f32 %v324_v60, %v326_v61  ;;  %v321_v0 = vmul.f32 0.015625, %v319_v62 }
 0x1b2   :  { %v323_v1 = vld [vmem:[#allocation4 + $0x8] sm:$0xff] }
 0x1b3   :  { %v330_v2 = vmax.f32 %v328_v63, 0.0  ;;  %v325_v3 = vmul.f32 0.015625, %v323_v1  ;;  %v327_v4 = vmul.f32 %v321_v0, %v321_v0 }
 0x1b5   :  { %v332_v5 = vadd.f32 1e-06, %v330_v2  ;;  %v329_v6 = vsub.f32 %v325_v3, %v327_v4 }
 0x1b7   :  { %495 = vrsqrt.f32 %v332_v5  ;;  %v331_v7 = vmax.f32 %v329_v6, 0.0 }
 0x1b9   :  { %v333_v8 = vadd.f32 1e-06, %v331_v7 }
 0x1bb   :  { %497 = vrsqrt.f32 %v333_v8 }
 0x1c4   :  { %v496_v9 = vpop.eup %495 }
 0x1c5   :  { %341 = vperm.xlu0 %470, %v496_v9   ;;  %v351_v10 = vmul.f32 %v496_v9, %v320_v58 }
 0x1c7   :  { %355 = vperm.xlu1 %471, %v351_v10  }
 0x1c8   :  { %v498_v11 = vpop.eup %497 }
 0x1c9   :  { %v352_v12 = vmul.f32 %v498_v11, %v321_v0 }
 0x1cb   :  { %346 = vperm.xlu1 %471, %v498_v11  }
 0x1cf   :  { %360 = vperm.xlu1 %471, %v352_v12  }
 0x1df   :  { %v304_v13 = vpop.f32.mrf.mxu1 }
 0x1e1   :  { %v457_v14 = vpop.f32.mrf.mxu1 }
 0x1e3   :  { %v307_v15 = vpop.f32.mrf.mxu1 }
 0x1e5   :  { %v458_v18 = vpop.f32.mrf.mxu1 }
 0x240   :  { %v342_v22 = vpop.permute.xlu0 %341 }
 0x241   :  { %v349_v25 = vmul.f32 %v342_v22, %v304_v13 }
 0x242   :  { %v356_v20 = vpop.permute.xlu1 %355 }
 0x243   :  { %v367_v24 = vmul.f32 %v366_v21, %v356_v20 }
 0x245   :  { %v369_v28 = vsub.f32 %v349_v25, %v367_v24 }
 0x246   :  { %v347_v23 = vpop.permute.xlu1 %346 }
 0x247   :  { %v350_v29 = vmul.f32 %v347_v23, %v307_v15  ;;  %v375_v33 = vadd.f32 %v374_v27, %v369_v28 }
 0x24a   :  { %v361_v26 = vpop.permute.xlu1 %360 }
 0x24b   :  { %v368_v30 = vmul.f32 %v366_v21, %v361_v26 }
 0x24d   :  { %v370_v32 = vsub.f32 %v350_v29, %v368_v30 }
 0x24f   :  { %v376_v34 = vadd.f32 %v374_v27, %v370_v32 }
 0x251   :  { %v428_v35 = vpack.c.bf16 %v376_v34, %v375_v33 }
 0x253   :  { %429 = vst [vmem:[#allocation11] sm:$0xff] %v428_v35  }
 0x254   :  { %570 = shalt.err (!%p567_p5)
}
 0x255   :  { %398 = dma.vmem_to_hbm [thread:$0]  %s393_s13, 128, %s678_s5, [#allocation7], %s589_s28, %s589_s28, %s590_s29  }
 0x256   :  { %583 = dma.done.wait [#allocation7], 128  }
 0x257   :  { %584 = vsyncadd [#allocation7], 4294967168 }
 0x258   :  { %402 = vsyncpa [#allocation6], 1 }
 0x259   :  { %403 = vsyncpa [#allocation9], 1 }
 0x25a   :  { %404 = vsyncpa [#allocation7], 1 }

</bundles_post_ra>
